<compile_context>
chip_gen: v6e
topology: v6e:2x2x1
jax: 0.10.0
libtpu: 0.0.40
codegen_flags: <defaults>
</compile_context>

<pallas_src>
import functools

import jax
import jax.numpy as jnp
from jax import lax
from jax.experimental import pallas as pl
from jax.experimental.pallas import tpu as pltpu


def _choose_tile(hw: int) -> int:
    """Largest lane-aligned H*W tile that divides hw and leaves >=2 loop steps."""
    for t in (2048, 1024, 512, 256, 128):
        if hw % t == 0 and hw // t >= 2:
            return t
    return hw


def _arm_kernel(x_ref, w1_ref, w2_ref, mask_ref, out_ref, xpad_ref, feat_ref,
                *, H, W, Cin, Cout, Cout_r, tile_hw, halo):
    """One batch element per grid step.

    x_ref    : (Cin, H*W)            f32  flat input image (VMEM)
    w1_ref   : (9, Cout_r, Cin)      bf16 per-tap 3x3 conv weights, k = dy*3+dx
    w2_ref   : (Cout_r, Cout_r)      f32  1x1 conv weight (out, in)
    mask_ref : (2, H*W)              bf16 [not-first-col, not-last-col] masks
    out_ref  : (Cout, H*W)           f32  output image (VMEM)
    xpad_ref : (Cin, H*W + 2*halo)   bf16 scratch: zero-haloed flat image
    feat_ref : (Cout_r, H*W)         f32  scratch: post-ReLU conv output
    """
    HW = H * W
    n_tiles = HW // tile_hw

    # ---- stage 0: build the zero-haloed bf16 copy of the input (once/image).
    # The halo (lane-aligned, >= W+1) of zeros on each side of the flat H*W
    # axis handles the vertical (row) borders of the padded 3x3 conv; the
    # horizontal (column) borders are handled by the lane masks below.
    zeros_halo = jnp.zeros((Cin, halo), jnp.bfloat16)
    xpad_ref[:, 0:halo] = zeros_halo
    xpad_ref[:, halo + HW:halo + HW + halo] = zeros_halo
    xpad_ref[:, halo:halo + HW] = x_ref[...].astype(jnp.bfloat16)

    # ---- pass 1: 3x3 conv (9 tap matmuls, bf16 in / f32 acc) + ReLU per tile,
    #      fused with a running channel-sum for the global average pool.
    def conv_tile(it, csum):
        t0 = pl.multiple_of(it * tile_hw, tile_hw)
        # One aligned slab load covering this tile plus both halos; the nine
        # taps below are static-offset slices of it (no im2col materialized).
        slab = xpad_ref[:, pl.ds(t0, tile_hw + 2 * halo)]        # (Cin, T+2*halo)
        m = mask_ref[:, pl.ds(t0, tile_hw)]                       # (2, T)
        m_left, m_right = m[0:1, :], m[1:2, :]

        acc = jnp.zeros((Cout_r, tile_hw), jnp.float32)
        for k in range(9):                                        # static unroll
            dy, dx = k // 3, k % 3
            off = halo + (dy - 1) * W + (dx - 1)                  # static offset
            xt = slab[:, off:off + tile_hw]                       # (Cin, T) bf16
            if dx == 0:
                xt = xt * m_left    # kill wrap-around from column W-1
            elif dx == 2:
                xt = xt * m_right   # kill wrap-around from column 0
            acc = acc + jnp.dot(w1_ref[k], xt,
                                preferred_element_type=jnp.float32)
        feat = jnp.maximum(acc, 0.0)                              # ReLU
        feat_ref[:, pl.ds(t0, tile_hw)] = feat
        return csum + jnp.sum(feat, axis=1, keepdims=True)        # (Cout_r, 1)

    csum = lax.fori_loop(0, n_tiles, conv_tile,
                         jnp.zeros((Cout_r, 1), jnp.float32))

    # ---- attention: global mean -> 1x1 conv (all f32) -> sigmoid.
    mean = csum * (1.0 / float(HW))                               # (Cout_r, 1)
    # Broadcast the column vector to 128 lanes so the tiny 1x1-conv matmul has
    # a standard MXU shape (all lanes identical; take lane 0 afterwards).
    mean_b = jnp.broadcast_to(mean, (Cout_r, 128))
    att = jnp.dot(w2_ref[...], mean_b, preferred_element_type=jnp.float32)
    att = jax.nn.sigmoid(att[:, 0:1])                             # (Cout_r, 1)
    att = att[0:Cout, :]                                          # (Cout, 1)

    # ---- pass 2: channel-wise re-weighting, tile by tile (lane-dense stores).
    @pl.loop(0, n_tiles)
    def _(it):
        t0 = pl.multiple_of(it * tile_hw, tile_hw)
        out_ref[:, pl.ds(t0, tile_hw)] = (
            feat_ref[0:Cout, pl.ds(t0, tile_hw)] * att).astype(out_ref.dtype)


def attention_refinement_module(x_nchw, w1_oihw, w2_oi):
    """x_nchw : (N, Cin, H, W) float32
       w1_oihw: (Cout, Cin, 3, 3) float32  (3x3 conv weight, PyTorch layout)
       w2_oi  : (Cout, Cout) float32       (1x1 conv weight, squeezed)
       returns (N, Cout, H, W) float32
    """
    N, Cin, H, W = x_nchw.shape
    Cout = w1_oihw.shape[0]
    HW = H * W
    Cout_r = ((Cout + 7) // 8) * 8               # sublane-align weight/feat rows
    tile_hw = _choose_tile(HW)
    halo = ((W + 1 + 127) // 128) * 128          # lane-aligned halo >= W+1

    # Free reshape only (contiguous): channels -> sublanes, flat H*W -> lanes.
    x_flat = x_nchw.reshape(N, Cin, HW)

    # 3x3 weight -> 9 per-tap (Cout_r, Cin) bf16 matrices, tap index k = dy*3+dx.
    w1_taps = jnp.transpose(w1_oihw, (2, 3, 0, 1)).reshape(9, Cout, Cin)
    w1_taps = jnp.pad(w1_taps,
                      ((0, 0), (0, Cout_r - Cout), (0, 0))).astype(jnp.bfloat16)

    # 1x1 weight stays (out, in) and f32 (latency-bound path -> keep precision).
    w2_p = jnp.pad(w2_oi, ((0, Cout_r - Cout), (0, Cout_r - Cout)))
    w2_p = w2_p.astype(jnp.float32)

    # Column-border masks (1.0 keep / 0.0 drop) for the horizontal taps of the
    # flat-H*W layout: row 0 masks output column 0, row 1 masks column W-1.
    col = jnp.arange(HW, dtype=jnp.int32) % W
    mask = jnp.stack([(col != 0), (col != W - 1)]).astype(jnp.bfloat16)  # (2,HW)

    kernel = functools.partial(
        _arm_kernel, H=H, W=W, Cin=Cin, Cout=Cout, Cout_r=Cout_r,
        tile_hw=tile_hw, halo=halo)

    out = pl.pallas_call(
        kernel,
        out_shape=jax.ShapeDtypeStruct((N, Cout, HW), jnp.float32),
        grid_spec=pltpu.PrefetchScalarGridSpec(
            num_scalar_prefetch=0,
            grid=(N,),
            in_specs=[
                pl.BlockSpec((None, Cin, HW), lambda b: (b, 0, 0)),
                pl.BlockSpec((9, Cout_r, Cin), lambda b: (0, 0, 0)),
                pl.BlockSpec((Cout_r, Cout_r), lambda b: (0, 0)),
                pl.BlockSpec((2, HW), lambda b: (0, 0)),
            ],
            out_specs=pl.BlockSpec((None, Cout, HW), lambda b: (b, 0, 0)),
            scratch_shapes=[
                pltpu.VMEM((Cin, HW + 2 * halo), jnp.bfloat16),  # haloed input
                pltpu.VMEM((Cout_r, HW), jnp.float32),           # post-ReLU feat
            ],
        ),
        compiler_params=pltpu.CompilerParams(
            dimension_semantics=("parallel",),
            # <= ~48 MiB so the same config is safe on v7x (64 MiB physical)
            # while still allowing whole-image blocks on v5e/v6e.
            vmem_limit_bytes=48 * 1024 * 1024),
    )(x_flat, w1_taps, w2_p, mask)

    # Free reshape back to NCHW (no transpose, no channel-padding slice).
    return out.reshape(N, Cout, H, W)


def _reference(x_nchw, w1_oihw, w2_oi):
    """Pure-JAX reference matching the PyTorch forward (BN_use=False)."""
    feat = jax.lax.conv_general_dilated(
        x_nchw, w1_oihw, window_strides=(1, 1), padding=((1, 1), (1, 1)),
        dimension_numbers=("NCHW", "OIHW", "NCHW"),
        precision=jax.lax.Precision.HIGHEST)
    feat = jnp.maximum(feat, 0.0)
    atten = jnp.mean(feat, axis=(2, 3), keepdims=True)            # (N,C,1,1)
    atten = jnp.einsum("oi,nihw->nohw", w2_oi, atten)
    atten = jax.nn.sigmoid(atten)
    return feat * atten


if __name__ == "__main__":
    # Small deterministic setup: batch=2, in_chan=4, out_chan=8, spatial=16.
    N, Cin, Cout, H, W = 2, 4, 8, 16, 16

    key = jax.random.PRNGKey(0)
    kx, k1, k2 = jax.random.split(key, 3)

    x = jax.random.normal(kx, (N, Cin, H, W), dtype=jnp.float32)

    # Kaiming normal init with a=1 => gain = 1, std = 1/sqrt(fan_in).
    std1 = 1.0 / jnp.sqrt(Cin * 3 * 3)
    std2 = 1.0 / jnp.sqrt(Cout * 1 * 1)
    w1 = jax.random.normal(k1, (Cout, Cin, 3, 3), dtype=jnp.float32) * std1
    w2 = jax.random.normal(k2, (Cout, Cout), dtype=jnp.float32) * std2

    out = attention_refinement_module(x, w1, w2)
    out = jax.block_until_ready(out)

    ref = _reference(x, w1, w2)
    assert out.shape == (N, Cout, H, W)
    assert jnp.allclose(out, ref, rtol=2e-2, atol=2e-2)

    print("KERNEL_OK")
</pallas_src>

<mosaic_0001>
module attributes {stable_mosaic.version = 11 : i64} {
  func.func @_arm_kernel(%arg0: i32, %arg1: memref<1x4x256xf32, #tpu.memory_space<vmem>>, %arg2: memref<9x8x4xbf16, #tpu.memory_space<vmem>>, %arg3: memref<8x8xf32, #tpu.memory_space<vmem>>, %arg4: memref<2x256xbf16, #tpu.memory_space<vmem>>, %arg5: memref<1x8x256xf32, #tpu.memory_space<vmem>>, %arg6: memref<4x512xbf16, #tpu.memory_space<vmem>>, %arg7: memref<8x256xf32, #tpu.memory_space<vmem>>) attributes {dimension_semantics = [#tpu.dimension_semantics<parallel>], iteration_bounds = array<i64: 2>, scalar_prefetch = 0 : i64, scratch_operands = 2 : i64, tpu.core_type = #tpu.core_type<tc>, window_params = [{transform_indices = @transform_0, window_bounds = array<i64: 1, 4, 256>}, {pipeline_mode = #tpu.pipeline_mode<synchronous>, transform_indices = @transform_1, window_bounds = array<i64: 9, 8, 4>}, {pipeline_mode = #tpu.pipeline_mode<synchronous>, transform_indices = @transform_2, window_bounds = array<i64: 8, 8>}, {pipeline_mode = #tpu.pipeline_mode<synchronous>, transform_indices = @transform_3, window_bounds = array<i64: 2, 256>}, {transform_indices = @transform_4, window_bounds = array<i64: 1, 8, 256>}]} {
    %cst = arith.constant 0.000000e+00 : bf16
    %0 = vector.broadcast %cst : bf16 to vector<4x128xbf16>
    %c0 = arith.constant 0 : index
    %c0_0 = arith.constant 0 : index
    %1 = vector.load %arg6[%c0, %c0_0] : memref<4x512xbf16, #tpu.memory_space<vmem>>, vector<4x128xbf16>
    tpu.vector_store %arg6[%c0, %c0_0], %0 {strides = array<i32>} : memref<4x512xbf16, #tpu.memory_space<vmem>>, vector<4x128xbf16>,
    %c0_1 = arith.constant 0 : index
    %c384 = arith.constant 384 : index
    %2 = vector.load %arg6[%c0_1, %c384] : memref<4x512xbf16, #tpu.memory_space<vmem>>, vector<4x128xbf16>
    tpu.vector_store %arg6[%c0_1, %c384], %0 {strides = array<i32>} : memref<4x512xbf16, #tpu.memory_space<vmem>>, vector<4x128xbf16>,
    %c0_2 = arith.constant 0 : index
    %c0_3 = arith.constant 0 : index
    %c0_4 = arith.constant 0 : index
    %3 = vector.load %arg1[%c0_2, %c0_3, %c0_4] : memref<1x4x256xf32, #tpu.memory_space<vmem>>, vector<1x4x256xf32>
    %4 = vector.shape_cast %3 : vector<1x4x256xf32> to vector<4x256xf32>
    %5 = arith.truncf %4 : vector<4x256xf32> to vector<4x256xbf16>
    %c0_5 = arith.constant 0 : index
    %c128 = arith.constant 128 : index
    %6 = vector.load %arg6[%c0_5, %c128] : memref<4x512xbf16, #tpu.memory_space<vmem>>, vector<4x256xbf16>
    tpu.vector_store %arg6[%c0_5, %c128], %5 {strides = array<i32>} : memref<4x512xbf16, #tpu.memory_space<vmem>>, vector<4x256xbf16>,
    %cst_6 = arith.constant 0.000000e+00 : f32
    %7 = vector.broadcast %cst_6 : f32 to vector<8x1xf32>
    %c0_i32 = arith.constant 0 : i32
    %c2_i32 = arith.constant 2 : i32
    %8 = arith.addi %c0_i32, %c2_i32 : i32
    %c1_i32 = arith.constant 1 : i32
    %9 = scf.for %arg8 = %c0_i32 to %8 step %c1_i32 iter_args(%arg9 = %7) -> (vector<8x1xf32>)  : i32 {
      %c128_i32 = arith.constant 128 : i32
      %23 = arith.muli %arg8, %c128_i32 : i32
      %24 = tpu.assume_multiple %23, 128 : i32
      %c0_17 = arith.constant 0 : index
      %25 = arith.index_cast %24 : i32 to index
      %26 = vector.load %arg6[%c0_17, %25] : memref<4x512xbf16, #tpu.memory_space<vmem>>, vector<4x384xbf16>
      %c0_18 = arith.constant 0 : index
      %27 = arith.index_cast %24 : i32 to index
      %28 = vector.load %arg4[%c0_18, %27] : memref<2x256xbf16, #tpu.memory_space<vmem>>, vector<2x128xbf16>
      %29 = vector.extract_strided_slice %28 {offsets = [0, 0], sizes = [1, 128], strides = [1, 1]} : vector<2x128xbf16> to vector<1x128xbf16>
      %30 = vector.extract_strided_slice %28 {offsets = [1, 0], sizes = [1, 128], strides = [1, 1]} : vector<2x128xbf16> to vector<1x128xbf16>
      %cst_19 = arith.constant 0.000000e+00 : f32
      %31 = vector.broadcast %cst_19 : f32 to vector<8x128xf32>
      %32 = vector.extract_strided_slice %26 {offsets = [0, 111], sizes = [4, 128], strides = [1, 1]} : vector<4x384xbf16> to vector<4x128xbf16>
      %33 = vector.broadcast %29 : vector<1x128xbf16> to vector<4x128xbf16>
      %34 = arith.mulf %32, %33 : vector<4x128xbf16>
      %c0_20 = arith.constant 0 : index
      %c0_21 = arith.constant 0 : index
      %c0_22 = arith.constant 0 : index
      %35 = vector.load %arg2[%c0_20, %c0_21, %c0_22] : memref<9x8x4xbf16, #tpu.memory_space<vmem>>, vector<1x8x4xbf16>
      %36 = vector.shape_cast %35 : vector<1x8x4xbf16> to vector<8x4xbf16>
      %cst_23 = arith.constant dense<0.000000e+00> : vector<8x128xf32>
      %37 = tpu.matmul %36, %34, %cst_23 {dimension_numbers = #tpu.dot_dimension_numbers<[1], [0], [0], [1], [0, 0, 1, 1], [], []>} : vector<8x4xbf16>, vector<4x128xbf16>, vector<8x128xf32> -> vector<8x128xf32>
      %38 = arith.addf %31, %37 : vector<8x128xf32>
      %39 = vector.extract_strided_slice %26 {offsets = [0, 112], sizes = [4, 128], strides = [1, 1]} : vector<4x384xbf16> to vector<4x128xbf16>
      %c1 = arith.constant 1 : index
      %c0_24 = arith.constant 0 : index
      %c0_25 = arith.constant 0 : index
      %40 = vector.load %arg2[%c1, %c0_24, %c0_25] : memref<9x8x4xbf16, #tpu.memory_space<vmem>>, vector<1x8x4xbf16>
      %41 = vector.shape_cast %40 : vector<1x8x4xbf16> to vector<8x4xbf16>
      %cst_26 = arith.constant dense<0.000000e+00> : vector<8x128xf32>
      %42 = tpu.matmul %41, %39, %cst_26 {dimension_numbers = #tpu.dot_dimension_numbers<[1], [0], [0], [1], [0, 0, 1, 1], [], []>} : vector<8x4xbf16>, vector<4x128xbf16>, vector<8x128xf32> -> vector<8x128xf32>
      %43 = arith.addf %38, %42 : vector<8x128xf32>
      %44 = vector.extract_strided_slice %26 {offsets = [0, 113], sizes = [4, 128], strides = [1, 1]} : vector<4x384xbf16> to vector<4x128xbf16>
      %45 = vector.broadcast %30 : vector<1x128xbf16> to vector<4x128xbf16>
      %46 = arith.mulf %44, %45 : vector<4x128xbf16>
      %c2 = arith.constant 2 : index
      %c0_27 = arith.constant 0 : index
      %c0_28 = arith.constant 0 : index
      %47 = vector.load %arg2[%c2, %c0_27, %c0_28] : memref<9x8x4xbf16, #tpu.memory_space<vmem>>, vector<1x8x4xbf16>
      %48 = vector.shape_cast %47 : vector<1x8x4xbf16> to vector<8x4xbf16>
      %cst_29 = arith.constant dense<0.000000e+00> : vector<8x128xf32>
      %49 = tpu.matmul %48, %46, %cst_29 {dimension_numbers = #tpu.dot_dimension_numbers<[1], [0], [0], [1], [0, 0, 1, 1], [], []>} : vector<8x4xbf16>, vector<4x128xbf16>, vector<8x128xf32> -> vector<8x128xf32>
      %50 = arith.addf %43, %49 : vector<8x128xf32>
      %51 = vector.extract_strided_slice %26 {offsets = [0, 127], sizes = [4, 128], strides = [1, 1]} : vector<4x384xbf16> to vector<4x128xbf16>
      %52 = vector.broadcast %29 : vector<1x128xbf16> to vector<4x128xbf16>
      %53 = arith.mulf %51, %52 : vector<4x128xbf16>
      %c3 = arith.constant 3 : index
      %c0_30 = arith.constant 0 : index
      %c0_31 = arith.constant 0 : index
      %54 = vector.load %arg2[%c3, %c0_30, %c0_31] : memref<9x8x4xbf16, #tpu.memory_space<vmem>>, vector<1x8x4xbf16>
      %55 = vector.shape_cast %54 : vector<1x8x4xbf16> to vector<8x4xbf16>
      %cst_32 = arith.constant dense<0.000000e+00> : vector<8x128xf32>
      %56 = tpu.matmul %55, %53, %cst_32 {dimension_numbers = #tpu.dot_dimension_numbers<[1], [0], [0], [1], [0, 0, 1, 1], [], []>} : vector<8x4xbf16>, vector<4x128xbf16>, vector<8x128xf32> -> vector<8x128xf32>
      %57 = arith.addf %50, %56 : vector<8x128xf32>
      %58 = vector.extract_strided_slice %26 {offsets = [0, 128], sizes = [4, 128], strides = [1, 1]} : vector<4x384xbf16> to vector<4x128xbf16>
      %c4 = arith.constant 4 : index
      %c0_33 = arith.constant 0 : index
      %c0_34 = arith.constant 0 : index
      %59 = vector.load %arg2[%c4, %c0_33, %c0_34] : memref<9x8x4xbf16, #tpu.memory_space<vmem>>, vector<1x8x4xbf16>
      %60 = vector.shape_cast %59 : vector<1x8x4xbf16> to vector<8x4xbf16>
      %cst_35 = arith.constant dense<0.000000e+00> : vector<8x128xf32>
      %61 = tpu.matmul %60, %58, %cst_35 {dimension_numbers = #tpu.dot_dimension_numbers<[1], [0], [0], [1], [0, 0, 1, 1], [], []>} : vector<8x4xbf16>, vector<4x128xbf16>, vector<8x128xf32> -> vector<8x128xf32>
      %62 = arith.addf %57, %61 : vector<8x128xf32>
      %63 = vector.extract_strided_slice %26 {offsets = [0, 129], sizes = [4, 128], strides = [1, 1]} : vector<4x384xbf16> to vector<4x128xbf16>
      %64 = vector.broadcast %30 : vector<1x128xbf16> to vector<4x128xbf16>
      %65 = arith.mulf %63, %64 : vector<4x128xbf16>
      %c5 = arith.constant 5 : index
      %c0_36 = arith.constant 0 : index
      %c0_37 = arith.constant 0 : index
      %66 = vector.load %arg2[%c5, %c0_36, %c0_37] : memref<9x8x4xbf16, #tpu.memory_space<vmem>>, vector<1x8x4xbf16>
      %67 = vector.shape_cast %66 : vector<1x8x4xbf16> to vector<8x4xbf16>
      %cst_38 = arith.constant dense<0.000000e+00> : vector<8x128xf32>
      %68 = tpu.matmul %67, %65, %cst_38 {dimension_numbers = #tpu.dot_dimension_numbers<[1], [0], [0], [1], [0, 0, 1, 1], [], []>} : vector<8x4xbf16>, vector<4x128xbf16>, vector<8x128xf32> -> vector<8x128xf32>
      %69 = arith.addf %62, %68 : vector<8x128xf32>
      %70 = vector.extract_strided_slice %26 {offsets = [0, 143], sizes = [4, 128], strides = [1, 1]} : vector<4x384xbf16> to vector<4x128xbf16>
      %71 = vector.broadcast %29 : vector<1x128xbf16> to vector<4x128xbf16>
      %72 = arith.mulf %70, %71 : vector<4x128xbf16>
      %c6 = arith.constant 6 : index
      %c0_39 = arith.constant 0 : index
      %c0_40 = arith.constant 0 : index
      %73 = vector.load %arg2[%c6, %c0_39, %c0_40] : memref<9x8x4xbf16, #tpu.memory_space<vmem>>, vector<1x8x4xbf16>
      %74 = vector.shape_cast %73 : vector<1x8x4xbf16> to vector<8x4xbf16>
      %cst_41 = arith.constant dense<0.000000e+00> : vector<8x128xf32>
      %75 = tpu.matmul %74, %72, %cst_41 {dimension_numbers = #tpu.dot_dimension_numbers<[1], [0], [0], [1], [0, 0, 1, 1], [], []>} : vector<8x4xbf16>, vector<4x128xbf16>, vector<8x128xf32> -> vector<8x128xf32>
      %76 = arith.addf %69, %75 : vector<8x128xf32>
      %77 = vector.extract_strided_slice %26 {offsets = [0, 144], sizes = [4, 128], strides = [1, 1]} : vector<4x384xbf16> to vector<4x128xbf16>
      %c7 = arith.constant 7 : index
      %c0_42 = arith.constant 0 : index
      %c0_43 = arith.constant 0 : index
      %78 = vector.load %arg2[%c7, %c0_42, %c0_43] : memref<9x8x4xbf16, #tpu.memory_space<vmem>>, vector<1x8x4xbf16>
      %79 = vector.shape_cast %78 : vector<1x8x4xbf16> to vector<8x4xbf16>
      %cst_44 = arith.constant dense<0.000000e+00> : vector<8x128xf32>
      %80 = tpu.matmul %79, %77, %cst_44 {dimension_numbers = #tpu.dot_dimension_numbers<[1], [0], [0], [1], [0, 0, 1, 1], [], []>} : vector<8x4xbf16>, vector<4x128xbf16>, vector<8x128xf32> -> vector<8x128xf32>
      %81 = arith.addf %76, %80 : vector<8x128xf32>
      %82 = vector.extract_strided_slice %26 {offsets = [0, 145], sizes = [4, 128], strides = [1, 1]} : vector<4x384xbf16> to vector<4x128xbf16>
      %83 = vector.broadcast %30 : vector<1x128xbf16> to vector<4x128xbf16>
      %84 = arith.mulf %82, %83 : vector<4x128xbf16>
      %c8 = arith.constant 8 : index
      %c0_45 = arith.constant 0 : index
      %c0_46 = arith.constant 0 : index
      %85 = vector.load %arg2[%c8, %c0_45, %c0_46] : memref<9x8x4xbf16, #tpu.memory_space<vmem>>, vector<1x8x4xbf16>
      %86 = vector.shape_cast %85 : vector<1x8x4xbf16> to vector<8x4xbf16>
      %cst_47 = arith.constant dense<0.000000e+00> : vector<8x128xf32>
      %87 = tpu.matmul %86, %84, %cst_47 {dimension_numbers = #tpu.dot_dimension_numbers<[1], [0], [0], [1], [0, 0, 1, 1], [], []>} : vector<8x4xbf16>, vector<4x128xbf16>, vector<8x128xf32> -> vector<8x128xf32>
      %88 = arith.addf %81, %87 : vector<8x128xf32>
      %cst_48 = arith.constant 0.000000e+00 : f32
      %89 = vector.broadcast %cst_48 : f32 to vector<8x128xf32>
      %90 = arith.maximumf %88, %89 : vector<8x128xf32>
      %c0_49 = arith.constant 0 : index
      %91 = arith.index_cast %24 : i32 to index
      %92 = vector.load %arg7[%c0_49, %91] : memref<8x256xf32, #tpu.memory_space<vmem>>, vector<8x128xf32>
      tpu.vector_store %arg7[%c0_49, %91], %90 {strides = array<i32>} : memref<8x256xf32, #tpu.memory_space<vmem>>, vector<8x128xf32>,
      %cst_50 = arith.constant dense<0.000000e+00> : vector<8xf32>
      %93 = vector.multi_reduction <add>, %90, %cst_50 [1] : vector<8x128xf32> to vector<8xf32>
      %94 = vector.shape_cast %93 : vector<8xf32> to vector<8x1xf32>
      %95 = arith.addf %arg9, %94 : vector<8x1xf32>
      scf.yield %95 : vector<8x1xf32>
    }
    %c2_i32_7 = arith.constant 2 : i32
    %cst_8 = arith.constant 3.906250e-03 : f32
    %10 = vector.broadcast %cst_8 : f32 to vector<8x1xf32>
    %11 = arith.mulf %9, %10 : vector<8x1xf32>
    %12 = vector.shape_cast %11 : vector<8x1xf32> to vector<8x1xf32>
    %13 = vector.broadcast %12 : vector<8x1xf32> to vector<8x128xf32>
    %c0_9 = arith.constant 0 : index
    %c0_10 = arith.constant 0 : index
    %14 = vector.load %arg3[%c0_9, %c0_10] : memref<8x8xf32, #tpu.memory_space<vmem>>, vector<8x8xf32>
    %cst_11 = arith.constant dense<0.000000e+00> : vector<8x128xf32>
    %15 = tpu.matmul %14, %13, %cst_11 {dimension_numbers = #tpu.dot_dimension_numbers<[1], [0], [0], [1], [0, 0, 1, 1], [], []>} : vector<8x8xf32>, vector<8x128xf32>, vector<8x128xf32> -> vector<8x128xf32>
    %16 = vector.extract_strided_slice %15 {offsets = [0, 0], sizes = [8, 1], strides = [1, 1]} : vector<8x128xf32> to vector<8x1xf32>
    %17 = arith.negf %16 : vector<8x1xf32>
    %18 = math.exp %17 : vector<8x1xf32>
    %cst_12 = arith.constant 1.000000e+00 : f32
    %19 = vector.broadcast %cst_12 : f32 to vector<8x1xf32>
    %20 = arith.addf %19, %18 : vector<8x1xf32>
    %21 = arith.divf %19, %20 : vector<8x1xf32>
    %c0_i32_13 = arith.constant 0 : i32
    %c2_i32_14 = arith.constant 2 : i32
    %22 = arith.addi %c0_i32_13, %c2_i32_14 : i32
    %c1_i32_15 = arith.constant 1 : i32
    scf.for %arg8 = %c0_i32_13 to %22 step %c1_i32_15  : i32 {
      %c1_i32_17 = arith.constant 1 : i32
      %23 = arith.muli %arg8, %c1_i32_17 : i32
      %c0_i32_18 = arith.constant 0 : i32
      %24 = arith.addi %c0_i32_18, %23 : i32
      %c128_i32 = arith.constant 128 : i32
      %25 = arith.muli %24, %c128_i32 : i32
      %26 = tpu.assume_multiple %25, 128 : i32
      %c0_19 = arith.constant 0 : index
      %27 = arith.index_cast %26 : i32 to index
      %28 = vector.load %arg7[%c0_19, %27] : memref<8x256xf32, #tpu.memory_space<vmem>>, vector<8x128xf32>
      %29 = vector.broadcast %21 : vector<8x1xf32> to vector<8x128xf32>
      %30 = arith.mulf %28, %29 : vector<8x128xf32>
      %c0_20 = arith.constant 0 : index
      %c0_21 = arith.constant 0 : index
      %31 = arith.index_cast %26 : i32 to index
      %32 = vector.load %arg5[%c0_20, %c0_21, %31] : memref<1x8x256xf32, #tpu.memory_space<vmem>>, vector<1x8x128xf32>
      %33 = vector.shape_cast %32 : vector<1x8x128xf32> to vector<8x128xf32>
      %34 = vector.shape_cast %30 : vector<8x128xf32> to vector<1x8x128xf32>
      tpu.vector_store %arg5[%c0_20, %c0_21, %31], %34 {strides = array<i32>} : memref<1x8x256xf32, #tpu.memory_space<vmem>>, vector<1x8x128xf32>,
    }
    %c2_i32_16 = arith.constant 2 : i32
    return
  }
  func.func @transform_0(%arg0: i32) -> (i32, i32, i32) {
    %c0_i32 = arith.constant 0 : i32
    %c0_i32_0 = arith.constant 0 : i32
    %c0_i32_1 = arith.constant 0 : i32
    return %arg0, %c0_i32, %c0_i32_0 : i32, i32, i32
  }
  func.func @transform_1(%arg0: i32) -> (i32, i32, i32) {
    %c0_i32 = arith.constant 0 : i32
    %c0_i32_0 = arith.constant 0 : i32
    %c0_i32_1 = arith.constant 0 : i32
    %c0_i32_2 = arith.constant 0 : i32
    return %c0_i32, %c0_i32_0, %c0_i32_1 : i32, i32, i32
  }
  func.func @transform_2(%arg0: i32) -> (i32, i32) {
    %c0_i32 = arith.constant 0 : i32
    %c0_i32_0 = arith.constant 0 : i32
    %c0_i32_1 = arith.constant 0 : i32
    return %c0_i32, %c0_i32_0 : i32, i32
  }
  func.func @transform_3(%arg0: i32) -> (i32, i32) {
    %c0_i32 = arith.constant 0 : i32
    %c0_i32_0 = arith.constant 0 : i32
    %c0_i32_1 = arith.constant 0 : i32
    return %c0_i32, %c0_i32_0 : i32, i32
  }
  func.func @transform_4(%arg0: i32) -> (i32, i32, i32) {
    %c0_i32 = arith.constant 0 : i32
    %c0_i32_0 = arith.constant 0 : i32
    %c0_i32_1 = arith.constant 0 : i32
    return %arg0, %c0_i32, %c0_i32_0 : i32, i32, i32
  }
}

</mosaic_0001>

<bundles_post_ra>
// kernel: tpu_custom_call.1
= control target key start
LH: loop header
LB: loop body
LE: loop exit
PB: predicated region body
PF: predicated region fallthrough
CT: control target
= control target key end

     0   :  { %9 = vsyncpa [#allocation5], 0  ;;  %s1600_s0 = inlined_call_operand.vmem [shape: f32[2,4,256], index: 0, kind: input, shape index: {}]   ;;  %s1601_s1 = inlined_call_operand.vmem [shape: bf16[9,8,4], index: 1, kind: input, shape index: {}]   ;;  %s1602_s2 = inlined_call_operand.vmem [shape: f32[8,8], index: 2, kind: input, shape index: {}]   ;;  %s1603_s3 = inlined_call_operand.vmem [shape: bf16[2,256], index: 3, kind: input, shape index: {}]   ;;  %s1604_s4 = inlined_call_operand.hbm [shape: f32[2,8,256], index: 4, kind: output, shape index: {}]  }
   0x1   :  { %11 = vsyncpa [#allocation5 + $0x1], 0  ;;  %s1356_s15 = smov 0   ;;  %s1358_s16 = smov 0  }
   0x2   :  { %s1360_s17 = smov 0   ;;  %s1362_s18 = smov 0  }
   0x3 LB: > { %s1377_s19 = sadd.s32 4294967295, %s1301_s18   ;;  %s1024_s20 = sadd.s32 4294967294, %s1301_s18   ;;  %s1301_s18 = sphi %s1362_s18, %s1611_s18   ;;  %s1297_s17 = sphi %s1360_s17, %s1610_s17   ;;  %s1293_s16 = sphi %s1358_s16, %s1609_s16   ;;  %s1289_s15 = sphi %s1356_s15, %s1608_s15  }
   0x4   : > { %s1381_s21 = sadd.s32 1, %s1301_s18   ;;  %s113_s22 = sadd.s32 1, %s1297_s17 }
   0x5   : > { %s110_s23 = ssub.s32 %s1301_s18, %s1381_s21  ;;  %p123_p0 = scmp.ne.s32.totalorder %s1297_s17, %s1293_s16 }
   0x6   : > { %p111_p1 = scmp.eq.s32.totalorder %s110_s23, 0  ;;  %p124_p2 = scmp.eq.s32.totalorder %s1377_s19, 1 }
   0x7   : > { %p129_p3 = scmp.ne.s32.totalorder %s1293_s16, %s1289_s15  ;;  %p130_p4 = scmp.eq.s32.totalorder %s1024_s20, 1 }
   0x8   : > { %s1392_s24 = scalar_select %p111_p1, %s1297_s17, %s113_s22  }
   0x9   : > { %p1394_p5 = por %p124_p2, %p123_p0  ;;  %p1398_p6 = por %p130_p4, %p129_p3 }
   0xa   : > { %p1027_p7 = scmp.ge.s32.totalorder %s1301_s18, 1  ;;  %p165_p8 = scmp.lt.s32.totalorder %s1301_s18, 3 }
   0xc   : > { %p166_p9 = pnand %p1027_p7, %p165_p8 }
   0xd   : > { %s188_s27 = sand.u32 (!%p166_p9), 1, %s1293_s16   ;;  %p191_p10 = scmp.lt.s32.totalorder (!%p166_p9), %s1377_s19, 1 }
   0xe   : > { %169 = sbr.rel (%p166_p9) target bundleno = 1017 (0x3f9), region = 36  ;;  %s1408_s28 = sshll.u32 (!%p166_p9), %s188_s27, 4 }
   0xf   : > { %s190_s8 = scalar_lea.vmem (!%p166_p9), [#allocation4], %s1408_s28  ;;  %s1417_s9 = smov (!%p166_p9), 0  }
  0x13   : > { %v1315_v0 = vmov 0   ;;  %s192_s29 = scalar_select %p191_p10, %s1377_s19, 1  ;;  %v1415_v4 = vmov 0.0  }
  0x14   : > { %197 = vst [vmem:[#allocation2] sm:$0x3] %v1315_v0  ;;  %198 = vst [vmem:[#allocation2 + $0x6] sm:$0x3] %v1315_v0 }
  0x15   : > { %s1063_s30 = sshll.u32 %s192_s29, 3 }
  0x16   : > { %s195_s7 = scalar_lea.vmem %s1600_s0, %s1063_s30 }
  0x17   : > { %v199_v1 = vld [vmem:[%s195_s7] sm:$0xff] }
  0x18   : > { %v201_v2 = vcombine.high %v199_v1, %v199_v1 }
  0x1a   : > { %v1031_v3 = vpack.c.bf16 %v201_v2, %v199_v1 }
  0x1c   : > { %1032 = vst.sshfl [vmem:[#allocation2 + $0x2] sm:$0x33 pattern:$0x76325410] %v1031_v3 }
  0x1d LB: >> { %v235_v5 = vlaneseq  ;;  %v1316_v6 = vmov 1983009808   ;;  %s1033_s10 = sshll.u32 %s1309_s9, 7  ;;  %s1317_s23 = smov 111   ;;  %v1321_v23 = vmov 0.0   ;;  %vm1322_vm0 = vmmov 0   ;;  %s1309_s9 = sphi %s1417_s9, %s222_s9   ;;  %v1305_v4 = vphi %v1415_v4, %v1607_v4  }
  0x1e   : >> { %v241_v7 = vunpack.c.l.s4 %v1316_v6  ;;  %s1426_s11 = sshra.s32 %s1033_s10, 7  ;;  %s1318_s29 = smov 127   ;;  %1085 = vmatprep.subr.bf16.mxu0 %v1321_v23  ;;  %1091 = vmatprep.subr.bf16.mxu1 %v1321_v23  ;;  %vm250_vm1 = vcmask 908288   ;;  %vm470_vm2 = vcmask 1039360   ;;  %vm399_vm3 = vcmask 924672  }
  0x1f   : >> { %v236_v8 = vshrl.u32 %v235_v5, 7  ;;  %s230_s14 = scalar_lea.vmem %s1603_s3, %s1426_s11  ;;  %s1034_s20 = sshll.u32 %s1426_s11, 1  ;;  %1087 = vmatprep.mubr.msk.bf16.mxu0 %vm1322_vm0, %v1321_v23  ;;  %1093 = vmatprep.mubr.msk.bf16.mxu1 %vm1322_vm0, %v1321_v23  ;;  %vm270_vm4 = vcmask 130048   ;;  %vm276_vm5 = vcmask 1041408   ;;  %v1035_v44 = vld [vmem:[%s1601_s1 + $0x4] sm:$0xf] }
  0x20   : >> { %v242_v9 = vunpack.c.0.s8 %v241_v7  ;;  %v231_v11 = vld [vmem:[%s230_s14] sm:$0x1]  ;;  %s228_s22 = scalar_lea.vmem [#allocation2], %s1034_s20  ;;  %s1319_s30 = smov 113   ;;  %vm272_vm6 = vcmask 31744   ;;  %vm333_vm7 = vcmask 138240  }
  0x21   : >> { %v237_v10 = vsub.s32 0, %v236_v8  ;;  %v233_v12 = vpack.i.b16 %v231_v11, %v231_v11  ;;  %v381_v14 = vshrl.u32 %v231_v11, 16  ;;  %s1320_s5 = smov 16   ;;  %s1323_s6 = smov 17   ;;  %vm418_vm8 = vcmask 121856  }
  0x22   : >> { %v1433_v13 = vsub.s32 %v242_v9, %v236_v8  ;;  %s1324_s12 = smov 15   ;;  %s1325_s13 = smov 1   ;;  %v254_v54 = vld [vmem:[%s1601_s1] sm:$0xf]  ;;  %vm489_vm9 = vcmask 7168   ;;  %vm713_vm10 = vcmask 916480  }
  0x23   : >> { %v1435_v15 = vrot.slane %v233_v12, %v237_v10  ;;  %v382_v16 = vpack.i.b16 %v381_v14, %v381_v14  ;;  %v1437_v17 = vld [vmem:[%s228_s22] sm:$0x3f]  ;;  %s1326_s14 = smov 112   ;;  %v1038_v59 = vld [vmem:[%s1601_s1 + $0x8] sm:$0xf]  ;;  %s222_s9 = sadd.s32 1, %s1309_s9  }
  0x24   : >> { %v264_v21 = vrot.slane %v1437_v17, %v1433_v13  ;;  %v701_v47 = vcombine.high %v1437_v17, %v1437_v17  ;;  %v1040_v3 = vld [vmem:[%s1601_s1 + $0xc] sm:$0xf]  ;;  %v1042_v12 = vld [vmem:[%s1601_s1 + $0x10] sm:$0xf]  ;;  %p219_p11 = scmp.ge.s32.totalorder %s222_s9, 2  }
  0x25   : >> { %v246_v18 = vrot.slane %v1435_v15, %v1433_v13  ;;  %v1441_v19 = vrot.slane %v382_v16, %v237_v10  ;;  %vm827_vm11 = vcmask (%p219_p11), 64512   ;;  %vm1328_vm12 = vmmov (%p219_p11), 0   ;;  %s1311_s9 = smov (%p219_p11), 0  }
  0x26   : >> { %v1450_v22 = vcombine.high %v264_v21, %v264_v21  ;;  %v708_v48 = vrot.slane %v701_v47, %v1433_v13 }
  0x27   : >> { %247 = vrot.lane.b32.xlu0 %v246_v18, %s1317_s23  ;;  %v395_v20 = vrot.slane %v1441_v19, %v1433_v13  ;;  %467 = vrot.lane.b32.xlu1 %v246_v18, %s1318_s29 }
  0x28   : >> { %v544_v61 = vsel %vm276_vm5, %v1450_v22, 0 }
  0x2b   : >> { %396 = vrot.lane.b32.xlu0 %v395_v20, %s1319_s30  ;;  %266 = vrot.lane.b32.xlu1 %v264_v21, %s1320_s5 }
  0x2f   : >> { %268 = vrot.lane.b32.xlu0 %v1450_v22, %s1320_s5 }
  0x99   : >> { %v248_v24 = vpop.permute.xlu0 %247  ;;  %v468_v25 = vpop.permute.xlu1 %467 }
  0x9a   : >> { %v249_v26 = vrot.slane %v248_v24, 6  ;;  %v469_v27 = vrot.slane %v468_v25, 6 }
  0x9c   : >> { %v251_v28 = vsel %vm250_vm1, %v249_v26, %v248_v24  ;;  %v471_v29 = vsel %vm470_vm2, %v469_v27, %v468_v25  ;;  %v1044_v24 = vld [vmem:[%s1601_s1 + $0x14] sm:$0xf]  ;;  %v1046_v27 = vld [vmem:[%s1601_s1 + $0x18] sm:$0xf] }
  0x9d   : >> { %v253_v30 = vmul.bf16 %v251_v28, %v1437_v17  ;;  %v397_v31 = vpop.permute.xlu0 %396  ;;  %v473_v33 = vmul.bf16 %v471_v29, %v1437_v17  ;;  %v267_v35 = vpop.permute.xlu1 %266  ;;  %v1048_v29 = vld [vmem:[%s1601_s1 + $0x1c] sm:$0xf] }
  0x9e   : >> { %v398_v32 = vrot.slane %v397_v31, 6 }
  0x9f   : >> { %v327_v34 = vrot.slane %v253_v30, %v1433_v13  ;;  %v483_v42 = vrot.slane %v473_v33, %v1433_v13 }
  0xa0   : >> { %v400_v36 = vsel %vm399_vm3, %v398_v32, %v397_v31 }
  0xa1   : >> { %v402_v37 = vmul.bf16 %v400_v36, %v1437_v17  ;;  %329 = vrot.lane.b32.xlu1 %v327_v34, %s1323_s6  ;;  %v328_v38 = vcombine.high %v327_v34, %v327_v34  ;;  %v269_v39 = vpop.permute.xlu0 %268  ;;  %v484_v46 = vcombine.high %v483_v42, %v483_v42 }
  0xa2   : >> { %v271_v40 = vsel %vm270_vm4, %v267_v35, %v269_v39 }
  0xa3   : >> { %331 = vrot.lane.b32.xlu0 %v328_v38, %s1323_s6  ;;  %v412_v41 = vrot.slane %v402_v37, %v1433_v13  ;;  %v278_v43 = vsel %vm276_vm5, %v271_v40, 0 }
  0xa4   : >> { %1086 = vmatpush3.bf16.msra.mxu0 %v278_v43 }
  0xa5   : >> { %414 = vrot.lane.b32.xlu1 %v412_v41, %s1324_s12  ;;  %v413_v45 = vcombine.high %v412_v41, %v412_v41  ;;  %1097 = vmatprep.subr.bf16.mxu0 %v1321_v23 }
  0xa7   : >> { %416 = vrot.lane.b32.xlu0 %v413_v45, %s1324_s12  ;;  %1088 = vmatmul.mubr.msk.bf16.vlgmr.msra.gmra.mxu0 %vm272_vm6, %v1035_v44 }
  0xa8   : >> { %1099 = vmatprep.mubr.msk.bf16.mxu0 %vm1322_vm0, %v1321_v23 }
  0xa9   : >> { %485 = vrot.lane.b32.xlu1 %v483_v42, %s1325_s13 }
  0xab   : >> { %487 = vrot.lane.b32.xlu0 %v484_v46, %s1325_s13 }
  0xad   : >> { %587 = vrot.lane.b32.xlu1 %v1437_v17, %s1318_s29 }
  0xaf   : >> { %643 = vrot.lane.b32.xlu0 %v1437_v17, %s1319_s30  ;;  %s1052_s30 = sshll.u32 %s1426_s11, 3 }
  0xb0   : >> { %s820_s5 = scalar_lea.vmem [#allocation3], %s1052_s30 }
  0xb1   : >> { %762 = vrot.lane.b32.xlu1 %v1437_v17, %s1317_s23 }
  0xb3   : >> { %709 = vrot.lane.b32.xlu0 %v1450_v22, %s1326_s14 }
  0xb5   : >> { %711 = vrot.lane.b32.xlu1 %v708_v48, %s1326_s14 }
 0x113   : >> { %v330_v49 = vpop.permute.xlu1 %329 }
 0x115   : >> { %v332_v50 = vpop.permute.xlu0 %331 }
 0x116   : >> { %v334_v51 = vsel %vm333_vm7, %v330_v49, %v332_v50 }
 0x117   : >> { %v415_v52 = vpop.permute.xlu1 %414  ;;  %v339_v53 = vsel %vm276_vm5, %v334_v51, 0 }
 0x118   : >> { %1092 = vmatpush3.bf16.msra.mxu1 %v339_v53 }
 0x119   : >> { %v417_v55 = vpop.permute.xlu0 %416  ;;  %1103 = vmatprep.subr.bf16.mxu1 %v1321_v23 }
 0x11a   : >> { %v419_v56 = vsel %vm418_vm8, %v415_v52, %v417_v55 }
 0x11b   : >> { %v424_v57 = vsel %vm276_vm5, %v419_v56, 0  ;;  %v486_v58 = vpop.permute.xlu1 %485  ;;  %1094 = vmatmul.mubr.msk.bf16.vlgmr.msra.gmra.mxu1 %vm272_vm6, %v254_v54 }
 0x11c   : >> { %1098 = vmatpush3.bf16.msra.mxu0 %v424_v57  ;;  %1105 = vmatprep.mubr.msk.bf16.mxu1 %vm1322_vm0, %v1321_v23 }
 0x11d   : >> { %v488_v60 = vpop.permute.xlu0 %487  ;;  %1109 = vmatprep.subr.bf16.mxu0 %v1321_v23 }
 0x11e   : >> { %v490_v62 = vsel %vm489_vm9, %v486_v58, %v488_v60 }
 0x11f   : >> { %v495_v63 = vsel %vm276_vm5, %v490_v62, 0  ;;  %1100 = vmatmul.mubr.msk.bf16.vlgmr.msra.gmra.mxu0 %vm272_vm6, %v1038_v59  ;;  %v588_v0 = vpop.permute.xlu1 %587 }
 0x120   : >> { %1104 = vmatpush3.bf16.msra.mxu1 %v495_v63  ;;  %v589_v1 = vrot.slane %v588_v0, 2  ;;  %v590_v2 = vrot.slane %v588_v0, 4  ;;  %1110 = vmatpush3.bf16.msra.mxu0 %v544_v61 }
 0x121   : >> { %v644_v5 = vpop.permute.xlu0 %643  ;;  %1111 = vmatprep.mubr.msk.bf16.mxu0 %vm1322_vm0, %v1321_v23  ;;  %1115 = vmatprep.subr.bf16.mxu1 %v1321_v23 }
 0x122   : >> { %v591_v6 = vsel %vm470_vm2, %v589_v1, %v590_v2  ;;  %v645_v7 = vrot.slane %v644_v5, 2  ;;  %v646_v8 = vrot.slane %v644_v5, 4  ;;  %1121 = vmatprep.subr.bf16.mxu0 %v1321_v23 }
 0x123   : >> { %1106 = vmatmul.mubr.msk.bf16.vlgmr.msra.gmra.mxu1 %vm272_vm6, %v1040_v3  ;;  %v593_v9 = vmul.bf16 %v591_v6, %v1441_v19  ;;  %v763_v10 = vpop.permute.xlu1 %762 }
 0x124   : >> { %v647_v11 = vsel %vm399_vm3, %v645_v7, %v646_v8  ;;  %v764_v13 = vrot.slane %v763_v10, 2  ;;  %v765_v14 = vrot.slane %v763_v10, 4  ;;  %1117 = vmatprep.mubr.msk.bf16.mxu1 %vm1322_vm0, %v1321_v23 }
 0x125   : >> { %v600_v16 = vsel %vm276_vm5, %v593_v9, 0  ;;  %v649_v17 = vmul.bf16 %v647_v11, %v1435_v15  ;;  %v710_v18 = vpop.permute.xlu0 %709 }
 0x126   : >> { %1116 = vmatpush3.bf16.msra.mxu1 %v600_v16  ;;  %v766_v20 = vsel %vm250_vm1, %v764_v13, %v765_v14  ;;  %v826_v14 = vld [vmem:[%s1602_s2] sm:$0xff] (%p219_p11)  ;;  %v1327_v16 = vmov (%p219_p11), 0.0  }
 0x127   : >> { %1112 = vmatmul.mubr.msk.bf16.vlgmr.msra.gmra.mxu0 %vm272_vm6, %v1042_v12  ;;  %v656_v21 = vsel %vm276_vm5, %v649_v17, 0  ;;  %v712_v22 = vpop.permute.xlu1 %711  ;;  %1127 = vmatprep.subr.bf16.mxu1 %v1321_v23  ;;  %v768_v26 = vmul.bf16 %v766_v20, %v1441_v19  ;;  %v1050_v19 = vld [vmem:[%s1601_s1 + $0x20] sm:$0xf] }
 0x128   : >> { %1122 = vmatpush3.bf16.msra.mxu0 %v656_v21  ;;  %v714_v25 = vsel %vm713_vm10, %v710_v18, %v712_v22  ;;  %1123 = vmatprep.mubr.msk.bf16.mxu0 %vm1322_vm0, %v1321_v23 }
 0x129   : >> { %v719_v15 = vsel %vm276_vm5, %v714_v25, 0  ;;  %1133 = vmatprep.subr.bf16.mxu0 %v1321_v23  ;;  %v775_v28 = vsel %vm276_vm5, %v768_v26, 0 }
 0x12b   : >> { %1118 = vmatmul.mubr.msk.bf16.vlgmr.msra.gmra.mxu1 %vm272_vm6, %v1044_v24 }
 0x12c   : >> { %1128 = vmatpush3.bf16.msra.mxu1 %v719_v15  ;;  %1129 = vmatprep.mubr.msk.bf16.mxu1 %vm1322_vm0, %v1321_v23 }
 0x12f   : >> { %1124 = vmatmul.mubr.msk.bf16.vlgmr.msra.gmra.mxu0 %vm272_vm6, %v1046_v27 }
 0x130   : >> { %1134 = vmatpush3.bf16.msra.mxu0 %v775_v28  ;;  %1135 = vmatprep.mubr.msk.bf16.mxu0 %vm1322_vm0, %v1321_v23 }
 0x131   : > { %1139 = vmatprep.subr.mxu0 (%p219_p11), %v1327_v16 }
 0x133   : >> { %1130 = vmatmul.mubr.msk.bf16.vlgmr.msra.gmra.mxu1 %vm272_vm6, %v1048_v29 }
 0x137   : >> { %1136 = vmatmul.mubr.msk.bf16.vlgmr.msra.gmra.mxu0 %vm272_vm6, %v1050_v19 }
 0x138   : > { %1141 = vmatprep.mubr.msk.f32.mxu0 (%p219_p11), %vm1328_vm12, %v1327_v16 }
 0x167   : >> { %v314_v30 = vpop.f32.mrf.mxu0 }
 0x169   : >> { %v1089_v31 = vpop.f32.mrf.mxu0 }
 0x16b   : >> { %v317_v32 = vpop.f32.mrf.mxu0 }
 0x16d   : >> { %v1090_v33 = vpop.f32.mrf.mxu0 }
 0x1db   : >> { %v375_v34 = vpop.f32.mrf.mxu1 }
 0x1dc   : >> { %v376_v47 = vadd.f32 %v375_v34, %v314_v30 }
 0x1dd   : >> { %v1095_v35 = vpop.f32.mrf.mxu1 }
 0x1df   : >> { %v378_v36 = vpop.f32.mrf.mxu1  ;;  %v460_v37 = vpop.f32.mrf.mxu0 }
 0x1e0   : >> { %v466_v50 = vadd.f32 %v460_v37, %v376_v47 }
 0x1e1   : >> { %v1096_v38 = vpop.f32.mrf.mxu1  ;;  %v1101_v39 = vpop.f32.mrf.mxu0 }
 0x1e3   : >> { %v463_v40 = vpop.f32.mrf.mxu0  ;;  %v531_v23 = vpop.f32.mrf.mxu1 }
 0x1e4   : >> { %v537_v53 = vadd.f32 %v531_v23, %v466_v50 }
 0x1e5   : >> { %v1102_v41 = vpop.f32.mrf.mxu0  ;;  %v1107_v42 = vpop.f32.mrf.mxu1 }
 0x1e7   : >> { %v534_v43 = vpop.f32.mrf.mxu1  ;;  %v580_v44 = vpop.f32.mrf.mxu0 }
 0x1e8   : >> { %v586_v56 = vadd.f32 %v580_v44, %v537_v53 }
 0x1e9   : >> { %v1108_v45 = vpop.f32.mrf.mxu1  ;;  %v1113_v46 = vpop.f32.mrf.mxu0 }
 0x1eb   : >> { %v583_v48 = vpop.f32.mrf.mxu0  ;;  %v636_v49 = vpop.f32.mrf.mxu1 }
 0x1ec   : >> { %v642_v59 = vadd.f32 %v636_v49, %v586_v56 }
 0x1ed   : >> { %v1114_v51 = vpop.f32.mrf.mxu0  ;;  %v1119_v52 = vpop.f32.mrf.mxu1 }
 0x1ef   : >> { %v639_v54 = vpop.f32.mrf.mxu1  ;;  %v692_v55 = vpop.f32.mrf.mxu0 }
 0x1f0   : >> { %v698_v62 = vadd.f32 %v692_v55, %v642_v59 }
 0x1f1   : >> { %v1120_v57 = vpop.f32.mrf.mxu1  ;;  %v1125_v58 = vpop.f32.mrf.mxu0 }
 0x1f3   : >> { %v695_v60 = vpop.f32.mrf.mxu0  ;;  %v755_v61 = vpop.f32.mrf.mxu1 }
 0x1f4   : >> { %v761_v1 = vadd.f32 %v755_v61, %v698_v62 }
 0x1f5   : >> { %v1126_v63 = vpop.f32.mrf.mxu0  ;;  %v1131_v0 = vpop.f32.mrf.mxu1 }
 0x1f7   : >> { %v811_v2 = vpop.f32.mrf.mxu0  ;;  %v758_v3 = vpop.f32.mrf.mxu1 }
 0x1f8   : >> { %v817_v5 = vadd.f32 %v811_v2, %v761_v1 }
 0x1f9   : >> { %v1137_v6 = vpop.f32.mrf.mxu0  ;;  %v1132_v7 = vpop.f32.mrf.mxu1 }
 0x1fa   : >> { %v818_v8 = vmax.f32 %v817_v5, 0.0 }
 0x1fb   : >> { %v814_v9 = vpop.f32.mrf.mxu0 }
 0x1fc   : >> { %821 = vst [vmem:[%s820_s5] sm:$0xff] %v818_v8  ;;  %822 = vadd.xlane.f32.xlu0 %v818_v8 }
 0x1fd   : >> { %v1138_v10 = vpop.f32.mrf.mxu0 }
 0x284   : > { %221 = sbr.rel (!%p219_p11) target bundleno = 29 (0x1d), region = 98 }
 0x285   : >> { %v823_v11 = vpop.xlane.xlu0 %822 }
 0x286   : >> { %v824_v12 = vadd.f32 %v1305_v4, %v823_v11  }
 0x288   : >> { %v1607_v4 = vmov %v824_v12  ;;  %v825_v13 = vmul.f32 (%p219_p11), 0.00390625, %v824_v12 }
 0x28a   : > { %1140 = vmatpush3.msra.mxu0 %v825_v13 }
 0x28b   : > { %1142 = vmatmul.mubr.msk.f32.vlgmr.msra.gmra.mxu0 %vm827_vm11, %v826_v14 }
 0x34b   : > { %v897_v4 = vpop.f32.mrf.mxu0 }
 0x34c   : > { %v1054_v17 = vmul.f32 -1.442695, %v897_v4 }
 0x34d   : > { %v1143_v18 = vpop.f32.mrf.mxu0 }
 0x34e   : > { %1224 = vpow2.f32 %v1054_v17 }
 0x35b   : > { %v1225_v20 = vpop.eup %1224 }
 0x35c   : > { %v904_v21 = vadd.f32 1.0, %v1225_v20 }
 0x35e   : > { %1226 = vrcp.f32 %v904_v21 }
 0x36b   : > { %v1227_v22 = vpop.eup %1226 }
 0x36c LB: >> { %v1329_v24 = vmov 0   ;;  %s1055_s7 = sshll.u32 %s1313_s9, 7  ;;  %s912_s9 = sadd.s32 1, %s1313_s9   ;;  %s1313_s9 = sphi %s1311_s9, %s912_s9  }
 0x36d   : >> { %1228 = vset.pattern.permute.xlu0 %v1329_v24  ;;  %s914_s10 = sshra.s32 %s1055_s7, 7  ;;  %p909_p12 = scmp.ge.s32.totalorder %s912_s9, 2  }
 0x36e   : >> { %921 = vperm.xlu0 %1228, %v1227_v22   ;;  %s1056_s12 = sshll.u32 %s914_s10, 3  ;;  %s1064_s20 = sshll.u32 (%p909_p12), %s1377_s19, 8 }
 0x36f   : >> { %s917_s13 = scalar_lea.vmem [#allocation3], %s1056_s12  ;;  %s926_s14 = scalar_lea.vmem %s190_s8, %s1056_s12 [#allocation4] }
 0x370   : >> { %v918_v25 = vld [vmem:[%s917_s13] sm:$0xff]  ;;  %s941_s29 = scalar_lea.hbm (%p909_p12), %s1604_s4, %s1064_s20  ;;  %s943_s30 = sshll.u32 (%p909_p12), %s190_s8, 4  ;;  %s944_s30 = int_to_ptr.vmem [resolvable:$true] %s943_s30 }
 0x371   : > { %s929_s5 = scalar_lea.sflag (%p909_p12), [#allocation5], %s188_s27  ;;  %s1229_s11 = scalar_lea.vmem (%p909_p12), %s944_s30, 256 }
 0x372   : > { %p1230_p13 = scmp.ne.s32.totalorder (%p909_p12), %s944_s30, %s1229_s11  ;;  %s1330_s6 = smov (%p909_p12), [#allocation4]  }
 0x373   : > { %s1233_s9 = sshll.u32 (%p909_p12), %s1330_s6, 4  ;;  %s1234_s9 = int_to_ptr.vmem [resolvable:$false] %s1233_s9 }
 0x374   : > { %p1231_p0 = pnand (%p909_p12), %p1230_p13, %p1394_p5  ;;  %s1235_s7 = scalar_lea.vmem (%p909_p12), %s1234_s9, 512 }
 0x375   : > { %p1236_p2 = scmp.lt.s32.totalorder (%p909_p12), %s944_s30, %s1234_s9  ;;  %p1237_p3 = scmp.lt.s32.totalorder (%p909_p12), %s1235_s7, %s1229_s11 }
 0x376   : > { %p1232_p1 = pneg (%p909_p12), %p1231_p0 }
 0x377   : > { %p1238_p4 = por (%p909_p12), %p1237_p3, %p1236_p2 }
 0x379   : > { %p1239_p7 = pnand (%p909_p12), %p1238_p4, %p1232_p1 }
 0x3e8   : > { %911 = sbr.rel (!%p909_p12) target bundleno = 876 (0x36c), region = 109 }
 0x3e9   : >> { %v922_v15 = vpop.permute.xlu0 %921 }
 0x3ea   : >> { %v924_v26 = vmul.f32 %v922_v15, %v918_v25 }
 0x3ec   : >> { %927 = vst [vmem:[%s926_s14] sm:$0xff] %v924_v26 }
 0x3ed   : > { %1242 = shalt.err (!%p1239_p7)
}
 0x3ee   : > { %s1243_s19 = scalar_lea.hbm %s941_s29, 256  ;;  %s1247_s8 = scalar_lea.hbm %s1604_s4, 512 }
 0x3ef   : > { %p1244_p8 = scmp.ne.s32.totalorder %s941_s29, %s1243_s19  ;;  %p1248_p11 = scmp.lt.s32.totalorder %s941_s29, %s1604_s4 }
 0x3f0   : > { %p1249_p12 = scmp.lt.s32.totalorder %s1247_s8, %s1243_s19 }
 0x3f1   : > { %p1245_p9 = pnand %p1244_p8, %p1394_p5 }
 0x3f2   : > { %p1250_p13 = por %p1249_p12, %p1248_p11 }
 0x3f3   : > { %p1246_p10 = pneg %p1245_p9 }
 0x3f5   : > { %p1251_p0 = pnand %p1250_p13, %p1246_p10 }
 0x3f7   : > { %1254 = shalt.err (!%p1251_p0)
}
 0x3f8   : > { %1144 = dma.vmem_to_hbm [thread:$0]  (%p1394_p5), %s944_s30, 256, %s941_s29, %s929_s5  }
 0x3f9 PF: > { %p1150_p1 = scmp.ge.s32.totalorder %s1301_s18, 2  ;;  %s955_s13 = sand.u32 1, %s1289_s15  }
 0x3fa   : > { %s956_s14 = scalar_lea.sflag [#allocation5], %s955_s13 }
 0x3fb   : > { %p1147_p2 = pnand %p1150_p1, %p1398_p6 }
 0x3fd   : > { %p1148_p3 = pneg %p1147_p2 }
 0x3ff   : > { %1284 = dma.done.wait (%p1148_p3), %s956_s14, 256  }
 0x400   : > { %1286 = vsyncadd (%p1148_p3), %s956_s14, 4294967040  ;;  %p14_p4 = scmp.ge.s32.totalorder %s1381_s21, 4   ;;  %s1608_s15 = smov %s1293_s16 }
 0x401   : > { %s1609_s16 = smov %s1297_s17  ;;  %s1610_s17 = smov %s1392_s24 }
 0x402   : > { %s1611_s18 = smov %s1381_s21  ;;  %16 = sbr.rel (!%p14_p4) target bundleno = 3 (0x3), region = 120 }
 0x407   :  { %961 = vsyncpa [#allocation5], 1 }
 0x408   :  { %963 = vsyncpa [#allocation5 + $0x1], 1 }

</bundles_post_ra>
